<compile_context>
chip_gen: v7x
topology: tpu7x:2x2x1
jax: 0.10.0
libtpu: 0.0.40
codegen_flags: <defaults>
</compile_context>

<pallas_src>
import functools

import jax
import jax.numpy as jnp
from jax.experimental import pallas as pl
from jax.experimental.pallas import tpu as pltpu

NEG_BIG = -1e30  # "minus infinity" that stays finite in bf16/f32 arithmetic


def _focal_partial_kernel(logits_ref, targets_ref, ce_out_ref, cnt_out_ref,
                          m_sc, s_sc, g_sc,
                          *, ignore_index, n_rows, vocab, tile_n, tile_v,
                          mask_cols):
    i = pl.program_id(0)          # row-tile index   ("parallel")
    k = pl.program_id(1)          # vocab-tile index ("arbitrary", innermost)

    @pl.when(k == 0)
    def _():
        m_sc[...] = jnp.full((tile_n, 1), NEG_BIG, jnp.float32)
        s_sc[...] = jnp.zeros((tile_n, 1), jnp.float32)
        g_sc[...] = jnp.zeros((tile_n, 1), jnp.float32)

    x = logits_ref[...].astype(jnp.float32)            # (tn, tv) f32 (cast in-kernel)
    t = targets_ref[...]                                # (tn, 1) int32

    col = jax.lax.broadcasted_iota(jnp.int32, x.shape, 1) + k * tile_v
    if mask_cols:
        # Ragged vocab edge: clamp out-of-range columns so they never win the max
        # nor contribute to the exp-sum / gather (also squashes any OOB-read NaNs).
        x = jnp.where(col < vocab, x, NEG_BIG)

    # Target-logit gather for this vocab slice via one-hot compare.
    g_sc[...] += jnp.sum(jnp.where(col == t, x, 0.0), axis=-1, keepdims=True)

    # Online (streaming) logsumexp over the vocab axis.
    m_prev = m_sc[...]
    m_new = jnp.maximum(m_prev, jnp.max(x, axis=-1, keepdims=True))
    s_sc[...] = s_sc[...] * jnp.exp(m_prev - m_new) + \
        jnp.sum(jnp.exp(x - m_new), axis=-1, keepdims=True)
    m_sc[...] = m_new

    @pl.when(k == pl.num_programs(1) - 1)
    def _():
        lse = m_sc[...] + jnp.log(s_sc[...])
        ce = lse - g_sc[...]                            # per-token CE, (tn, 1)
        # Ragged row edge: zero CE of rows past the real row count.
        row = jax.lax.broadcasted_iota(jnp.int32, (tile_n, 1), 0) + i * tile_n
        valid = row < n_rows
        ce = jnp.where(valid, ce, 0.0)
        if ignore_index is not None:
            keep = jnp.logical_and(valid, t != ignore_index)
        else:
            keep = valid
        # Lane-dense per-row-tile partials (no serializing accumulator -> the row
        # axis can be split across TensorCores).
        ce_sum = jnp.sum(ce, keepdims=True)                         # (1, 1)
        cnt_sum = jnp.sum(keep.astype(jnp.float32), keepdims=True)  # (1, 1)
        ce_out_ref[...] = jnp.broadcast_to(ce_sum, (1, 8, 128))
        cnt_out_ref[...] = jnp.broadcast_to(cnt_sum, (1, 8, 128))


def _vmem_capacity_bytes():
    try:
        info = pltpu.get_tpu_info()
        cap = int(getattr(info, "vmem_capacity_bytes", 0) or 0)
        if cap > 0:
            return cap
    except Exception:
        pass
    return 64 * 1024 * 1024   # conservative fallback: v7x per-core VMEM


def _round_up(x, m):
    return -(-x // m) * m


def focal_loss(inputs, targets, *, gamma=2.0, reduction='mean', ignore_index=None,
               max_tile_v=2048, max_tile_n=1024):
    """Pallas TPU FocalLoss.forward.

    inputs:  (B, S, V) logits (any float dtype; streamed in native dtype)
    targets: (B, S)    int token ids
    returns: scalar float32 loss ('mean'/'sum') or (B, S) float32 ('none')
    """
    B, S, V = inputs.shape
    n = B * S
    logits = inputs.reshape(n, V)                      # NO dtype upcast, NO padding
    tgt = targets.reshape(n, 1).astype(jnp.int32)

    # --- vocab tiling (ragged edge masked in-kernel, no HBM padding) ---------
    tv = V if V <= max_tile_v else max_tile_v          # max_tile_v is a mult. of 128
    num_v_tiles = pl.cdiv(V, tv)
    mask_cols = (num_v_tiles * tv != V)

    # --- row tiling: sized from per-core VMEM capacity -----------------------
    vmem_cap = _vmem_capacity_bytes()
    in_itemsize = jnp.dtype(logits.dtype).itemsize
    sub = 8 * max(1, 4 // in_itemsize)                 # sublane multiple per dtype
    budget = int(vmem_cap * 0.4)                       # headroom for pipeline/temps
    # 2 double-buffered native-dtype input rows + ~4 f32 tile-sized temporaries
    # (f32 cast, exp, iota/compare, select) + lane-padded per-row f32 scratch.
    per_row = tv * (2 * in_itemsize + 4 * 4) + 3 * 512
    tn = max(sub, min(max_tile_n, (budget // per_row) // sub * sub))
    tn = min(tn, _round_up(n, sub))                    # don't over-allocate tiny inputs
    num_row_tiles = pl.cdiv(n, tn)

    kernel = functools.partial(
        _focal_partial_kernel,
        ignore_index=None if ignore_index is None else int(ignore_index),
        n_rows=n, vocab=V, tile_n=tn, tile_v=tv, mask_cols=mask_cols)

    ce_parts, cnt_parts = pl.pallas_call(
        kernel,
        out_shape=(jax.ShapeDtypeStruct((num_row_tiles, 8, 128), jnp.float32),
                   jax.ShapeDtypeStruct((num_row_tiles, 8, 128), jnp.float32)),
        grid=(num_row_tiles, num_v_tiles),
        in_specs=[
            pl.BlockSpec((tn, tv), lambda i, k: (i, k)),   # logits tile
            pl.BlockSpec((tn, 1), lambda i, k: (i, 0)),    # matching target ids
        ],
        out_specs=(
            pl.BlockSpec((1, 8, 128), lambda i, k: (i, 0, 0)),
            pl.BlockSpec((1, 8, 128), lambda i, k: (i, 0, 0)),
        ),
        scratch_shapes=[
            pltpu.VMEM((tn, 1), jnp.float32),   # running row max
            pltpu.VMEM((tn, 1), jnp.float32),   # running sum of exp
            pltpu.VMEM((tn, 1), jnp.float32),   # target-logit accumulator
        ],
        compiler_params=pltpu.CompilerParams(
            dimension_semantics=("parallel", "arbitrary"),
            vmem_limit_bytes=int(vmem_cap * 0.9)),
    )(logits, tgt)

    # Tiny scalar epilogue in JAX (matches the module's quirky math: focal
    # weighting of the SCALAR mean CE; CE mean is over ALL tokens incl. ignored).
    sum_ce = jnp.sum(ce_parts[:, 0, 0])
    cnt = jnp.sum(cnt_parts[:, 0, 0])
    ce_mean = sum_ce / jnp.float32(n)          # F.cross_entropy reduction='mean'
    pt = jnp.exp(-ce_mean)
    weight = (1.0 - pt) ** jnp.float32(gamma)

    if reduction == 'mean':
        focal_sum = cnt * weight * ce_mean
        return jnp.where(cnt > 0.0, focal_sum / jnp.maximum(cnt, 1.0),
                         jnp.float32(0.0))
    elif reduction == 'sum':
        return cnt * weight * ce_mean
    else:  # 'none': per-token focal of the broadcast scalar CE
        if ignore_index is not None:
            mask = (targets != ignore_index)
        else:
            mask = jnp.ones_like(targets, dtype=bool)
        ce_m = ce_mean * mask.astype(jnp.float32)
        return (1.0 - jnp.exp(-ce_m)) ** jnp.float32(gamma) * ce_m


def _ref_focal_loss(inputs, targets, gamma=2.0, ignore_index=None):
    """Pure-JAX reference reproducing the PyTorch module's math (reduction='mean')."""
    B, S, V = inputs.shape
    logits = inputs.reshape(-1, V).astype(jnp.float32)
    t = targets.reshape(-1)
    if ignore_index is not None:
        mask = (t != ignore_index)
    else:
        mask = jnp.ones_like(t, dtype=bool)
    logp = jax.nn.log_softmax(logits, axis=-1)
    ce = -jnp.take_along_axis(logp, t[:, None], axis=-1)[:, 0]
    ce_mean = ce.mean()                         # F.cross_entropy reduction='mean'
    ce_m = ce_mean * mask
    pt = jnp.exp(-ce_m)
    focal = (1.0 - pt) ** gamma * ce_m
    cnt = mask.sum()
    return jnp.where(cnt > 0, focal.sum() / cnt.astype(jnp.float32),
                     jnp.float32(0.0))


if __name__ == "__main__":
    key = jax.random.PRNGKey(0)
    k1, k2 = jax.random.split(key)
    B, S, V = 2, 8, 32                     # batch=2, seq=8, vocab=32
    inputs = jax.random.normal(k1, (B, S, V), dtype=jnp.float32)
    targets = jax.random.randint(k2, (B, S), 0, V, dtype=jnp.int32)

    gamma, ignore_index = 2.0, 0           # exercise the ignore/mask path

    out = focal_loss(inputs, targets, gamma=gamma, reduction='mean',
                     ignore_index=ignore_index)
    out = jax.block_until_ready(out)

    ref = _ref_focal_loss(inputs, targets, gamma=gamma, ignore_index=ignore_index)
    assert jnp.allclose(out, ref, atol=1e-5, rtol=1e-5), (out, ref)
    print("KERNEL_OK")
</pallas_src>

<mosaic_0001>
module attributes {stable_mosaic.version = 11 : i64} {
  func.func @_focal_partial_kernel(%arg0: i32, %arg1: i32, %arg2: memref<16x32xf32, #tpu.memory_space<vmem>>, %arg3: memref<16x1xi32, #tpu.memory_space<vmem>>, %arg4: memref<1x8x128xf32, #tpu.memory_space<vmem>>, %arg5: memref<1x8x128xf32, #tpu.memory_space<vmem>>, %arg6: memref<16x1xf32, #tpu.memory_space<vmem>>, %arg7: memref<16x1xf32, #tpu.memory_space<vmem>>, %arg8: memref<16x1xf32, #tpu.memory_space<vmem>>) attributes {dimension_semantics = [#tpu.dimension_semantics<parallel>, #tpu.dimension_semantics<arbitrary>], iteration_bounds = array<i64: 1, 1>, scalar_prefetch = 0 : i64, scratch_operands = 3 : i64, tpu.core_type = #tpu.core_type<tc>, window_params = [{transform_indices = @transform_0, window_bounds = array<i64: 16, 32>}, {transform_indices = @transform_1, window_bounds = array<i64: 16, 1>}, {transform_indices = @transform_2, window_bounds = array<i64: 1, 8, 128>}, {transform_indices = @transform_3, window_bounds = array<i64: 1, 8, 128>}]} {
    %c0_i32 = arith.constant 0 : i32
    %0 = arith.cmpi eq, %arg1, %c0_i32 : i32
    %1 = arith.extui %0 : i1 to i32
    %c0_i32_0 = arith.constant 0 : i32
    %2 = arith.cmpi ne, %1, %c0_i32_0 : i32
    scf.if %2 {
      %cst_21 = arith.constant -1.000000e+30 : f32
      %37 = vector.broadcast %cst_21 : f32 to vector<16x1xf32>
      %c0_22 = arith.constant 0 : index
      %c0_23 = arith.constant 0 : index
      %38 = vector.load %arg6[%c0_22, %c0_23] : memref<16x1xf32, #tpu.memory_space<vmem>>, vector<16x1xf32>
      tpu.vector_store %arg6[%c0_22, %c0_23], %37 {strides = array<i32>} : memref<16x1xf32, #tpu.memory_space<vmem>>, vector<16x1xf32>,
      %cst_24 = arith.constant 0.000000e+00 : f32
      %39 = vector.broadcast %cst_24 : f32 to vector<16x1xf32>
      %c0_25 = arith.constant 0 : index
      %c0_26 = arith.constant 0 : index
      %40 = vector.load %arg7[%c0_25, %c0_26] : memref<16x1xf32, #tpu.memory_space<vmem>>, vector<16x1xf32>
      tpu.vector_store %arg7[%c0_25, %c0_26], %39 {strides = array<i32>} : memref<16x1xf32, #tpu.memory_space<vmem>>, vector<16x1xf32>,
      %cst_27 = arith.constant 0.000000e+00 : f32
      %41 = vector.broadcast %cst_27 : f32 to vector<16x1xf32>
      %c0_28 = arith.constant 0 : index
      %c0_29 = arith.constant 0 : index
      %42 = vector.load %arg8[%c0_28, %c0_29] : memref<16x1xf32, #tpu.memory_space<vmem>>, vector<16x1xf32>
      tpu.vector_store %arg8[%c0_28, %c0_29], %41 {strides = array<i32>} : memref<16x1xf32, #tpu.memory_space<vmem>>, vector<16x1xf32>,
    } else {
    }
    %c0 = arith.constant 0 : index
    %c0_1 = arith.constant 0 : index
    %3 = vector.load %arg2[%c0, %c0_1] : memref<16x32xf32, #tpu.memory_space<vmem>>, vector<16x32xf32>
    %c0_2 = arith.constant 0 : index
    %c0_3 = arith.constant 0 : index
    %4 = vector.load %arg3[%c0_2, %c0_3] : memref<16x1xi32, #tpu.memory_space<vmem>>, vector<16x1xi32>
    %5 = tpu.iota {dimensions = array<i32: 1>} : vector<16x32xi32>
    %c32_i32 = arith.constant 32 : i32
    %6 = arith.muli %arg1, %c32_i32 : i32
    %7 = vector.broadcast %6 : i32 to vector<16x32xi32>
    %8 = arith.addi %5, %7 : vector<16x32xi32>
    %c0_4 = arith.constant 0 : index
    %c0_5 = arith.constant 0 : index
    %9 = vector.load %arg8[%c0_4, %c0_5] : memref<16x1xf32, #tpu.memory_space<vmem>>, vector<16x1xf32>
    %10 = vector.broadcast %4 : vector<16x1xi32> to vector<16x32xi32>
    %11 = arith.cmpi eq, %8, %10 : vector<16x32xi32>
    %cst = arith.constant 0.000000e+00 : f32
    %12 = vector.broadcast %cst : f32 to vector<16x32xf32>
    %13 = arith.select %11, %3, %12 : vector<16x32xi1>, vector<16x32xf32>
    %cst_6 = arith.constant dense<0.000000e+00> : vector<16xf32>
    %14 = vector.multi_reduction <add>, %13, %cst_6 [1] : vector<16x32xf32> to vector<16xf32>
    %15 = vector.shape_cast %14 : vector<16xf32> to vector<16x1xf32>
    %16 = arith.addf %9, %15 : vector<16x1xf32>
    %c0_7 = arith.constant 0 : index
    %c0_8 = arith.constant 0 : index
    %17 = vector.load %arg8[%c0_7, %c0_8] : memref<16x1xf32, #tpu.memory_space<vmem>>, vector<16x1xf32>
    tpu.vector_store %arg8[%c0_7, %c0_8], %16 {strides = array<i32>} : memref<16x1xf32, #tpu.memory_space<vmem>>, vector<16x1xf32>,
    %c0_9 = arith.constant 0 : index
    %c0_10 = arith.constant 0 : index
    %18 = vector.load %arg6[%c0_9, %c0_10] : memref<16x1xf32, #tpu.memory_space<vmem>>, vector<16x1xf32>
    %cst_11 = arith.constant dense<0xFF800000> : vector<16xf32>
    %19 = vector.multi_reduction <maximumf>, %3, %cst_11 [1] : vector<16x32xf32> to vector<16xf32>
    %20 = vector.shape_cast %19 : vector<16xf32> to vector<16x1xf32>
    %21 = arith.maximumf %18, %20 : vector<16x1xf32>
    %c0_12 = arith.constant 0 : index
    %c0_13 = arith.constant 0 : index
    %22 = vector.load %arg7[%c0_12, %c0_13] : memref<16x1xf32, #tpu.memory_space<vmem>>, vector<16x1xf32>
    %23 = arith.subf %18, %21 : vector<16x1xf32>
    %24 = math.exp %23 : vector<16x1xf32>
    %25 = arith.mulf %22, %24 : vector<16x1xf32>
    %26 = vector.broadcast %21 : vector<16x1xf32> to vector<16x32xf32>
    %27 = arith.subf %3, %26 : vector<16x32xf32>
    %28 = math.exp %27 : vector<16x32xf32>
    %cst_14 = arith.constant dense<0.000000e+00> : vector<16xf32>
    %29 = vector.multi_reduction <add>, %28, %cst_14 [1] : vector<16x32xf32> to vector<16xf32>
    %30 = vector.shape_cast %29 : vector<16xf32> to vector<16x1xf32>
    %31 = arith.addf %25, %30 : vector<16x1xf32>
    %c0_15 = arith.constant 0 : index
    %c0_16 = arith.constant 0 : index
    %32 = vector.load %arg7[%c0_15, %c0_16] : memref<16x1xf32, #tpu.memory_space<vmem>>, vector<16x1xf32>
    tpu.vector_store %arg7[%c0_15, %c0_16], %31 {strides = array<i32>} : memref<16x1xf32, #tpu.memory_space<vmem>>, vector<16x1xf32>,
    %c0_17 = arith.constant 0 : index
    %c0_18 = arith.constant 0 : index
    %33 = vector.load %arg6[%c0_17, %c0_18] : memref<16x1xf32, #tpu.memory_space<vmem>>, vector<16x1xf32>
    tpu.vector_store %arg6[%c0_17, %c0_18], %21 {strides = array<i32>} : memref<16x1xf32, #tpu.memory_space<vmem>>, vector<16x1xf32>,
    %c0_i32_19 = arith.constant 0 : i32
    %34 = arith.cmpi eq, %arg1, %c0_i32_19 : i32
    %35 = arith.extui %34 : i1 to i32
    %c0_i32_20 = arith.constant 0 : i32
    %36 = arith.cmpi ne, %35, %c0_i32_20 : i32
    scf.if %36 {
      %c0_21 = arith.constant 0 : index
      %c0_22 = arith.constant 0 : index
      %37 = vector.load %arg6[%c0_21, %c0_22] : memref<16x1xf32, #tpu.memory_space<vmem>>, vector<16x1xf32>
      %c0_23 = arith.constant 0 : index
      %c0_24 = arith.constant 0 : index
      %38 = vector.load %arg7[%c0_23, %c0_24] : memref<16x1xf32, #tpu.memory_space<vmem>>, vector<16x1xf32>
      %39 = math.log %38 : vector<16x1xf32>
      %40 = arith.addf %37, %39 : vector<16x1xf32>
      %c0_25 = arith.constant 0 : index
      %c0_26 = arith.constant 0 : index
      %41 = vector.load %arg8[%c0_25, %c0_26] : memref<16x1xf32, #tpu.memory_space<vmem>>, vector<16x1xf32>
      %42 = arith.subf %40, %41 : vector<16x1xf32>
      %43 = tpu.iota {dimensions = array<i32: 0>} : vector<16x1xi32>
      %c16_i32 = arith.constant 16 : i32
      %44 = arith.muli %arg0, %c16_i32 : i32
      %45 = vector.broadcast %44 : i32 to vector<16x1xi32>
      %46 = arith.addi %43, %45 : vector<16x1xi32>
      %c16_i32_27 = arith.constant 16 : i32
      %47 = vector.broadcast %c16_i32_27 : i32 to vector<16x1xi32>
      %48 = arith.cmpi slt, %46, %47 : vector<16x1xi32>
      %cst_28 = arith.constant 0.000000e+00 : f32
      %49 = vector.broadcast %cst_28 : f32 to vector<16x1xf32>
      %50 = arith.select %48, %42, %49 : vector<16x1xi1>, vector<16x1xf32>
      %c0_i32_29 = arith.constant 0 : i32
      %51 = vector.broadcast %c0_i32_29 : i32 to vector<16x1xi32>
      %52 = arith.cmpi ne, %4, %51 : vector<16x1xi32>
      %53 = arith.andi %48, %52 : vector<16x1xi1>
      %54 = vector.shape_cast %50 : vector<16x1xf32> to vector<1x16x1xf32>
      %cst_30 = arith.constant dense<0.000000e+00> : vector<1xf32>
      %55 = vector.multi_reduction <add>, %54, %cst_30 [1, 2] : vector<1x16x1xf32> to vector<1xf32>
      %56 = vector.shape_cast %55 : vector<1xf32> to vector<1x1x1xf32>
      %57 = vector.extract %56[0, 0, 0] : f32 from vector<1x1x1xf32>
      %58 = vector.broadcast %57 : f32 to vector<1x1xf32>
      %59 = arith.extui %53 : vector<16x1xi1> to vector<16x1xi32>
      %60 = arith.sitofp %59 : vector<16x1xi32> to vector<16x1xf32>
      %61 = vector.shape_cast %60 : vector<16x1xf32> to vector<1x16x1xf32>
      %cst_31 = arith.constant dense<0.000000e+00> : vector<1xf32>
      %62 = vector.multi_reduction <add>, %61, %cst_31 [1, 2] : vector<1x16x1xf32> to vector<1xf32>
      %63 = vector.shape_cast %62 : vector<1xf32> to vector<1x1x1xf32>
      %64 = vector.extract %63[0, 0, 0] : f32 from vector<1x1x1xf32>
      %65 = vector.broadcast %64 : f32 to vector<1x1xf32>
      %66 = vector.shape_cast %58 : vector<1x1xf32> to vector<1x1x1xf32>
      %67 = vector.broadcast %66 : vector<1x1x1xf32> to vector<1x8x128xf32>
      %c0_32 = arith.constant 0 : index
      %c0_33 = arith.constant 0 : index
      %c0_34 = arith.constant 0 : index
      %68 = vector.load %arg4[%c0_32, %c0_33, %c0_34] : memref<1x8x128xf32, #tpu.memory_space<vmem>>, vector<1x8x128xf32>
      tpu.vector_store %arg4[%c0_32, %c0_33, %c0_34], %67 {strides = array<i32>} : memref<1x8x128xf32, #tpu.memory_space<vmem>>, vector<1x8x128xf32>,
      %69 = vector.shape_cast %65 : vector<1x1xf32> to vector<1x1x1xf32>
      %70 = vector.broadcast %69 : vector<1x1x1xf32> to vector<1x8x128xf32>
      %c0_35 = arith.constant 0 : index
      %c0_36 = arith.constant 0 : index
      %c0_37 = arith.constant 0 : index
      %71 = vector.load %arg5[%c0_35, %c0_36, %c0_37] : memref<1x8x128xf32, #tpu.memory_space<vmem>>, vector<1x8x128xf32>
      tpu.vector_store %arg5[%c0_35, %c0_36, %c0_37], %70 {strides = array<i32>} : memref<1x8x128xf32, #tpu.memory_space<vmem>>, vector<1x8x128xf32>,
    } else {
    }
    return
  }
  func.func @transform_0(%arg0: i32, %arg1: i32) -> (i32, i32) {
    %c0_i32 = arith.constant 0 : i32
    return %arg0, %arg1 : i32, i32
  }
  func.func @transform_1(%arg0: i32, %arg1: i32) -> (i32, i32) {
    %c0_i32 = arith.constant 0 : i32
    %c0_i32_0 = arith.constant 0 : i32
    return %arg0, %c0_i32 : i32, i32
  }
  func.func @transform_2(%arg0: i32, %arg1: i32) -> (i32, i32, i32) {
    %c0_i32 = arith.constant 0 : i32
    %c0_i32_0 = arith.constant 0 : i32
    %c0_i32_1 = arith.constant 0 : i32
    return %arg0, %c0_i32, %c0_i32_0 : i32, i32, i32
  }
  func.func @transform_3(%arg0: i32, %arg1: i32) -> (i32, i32, i32) {
    %c0_i32 = arith.constant 0 : i32
    %c0_i32_0 = arith.constant 0 : i32
    %c0_i32_1 = arith.constant 0 : i32
    return %arg0, %c0_i32, %c0_i32_0 : i32, i32, i32
  }
}

</mosaic_0001>

<bundles_post_ra>
// kernel: tpu_custom_call.1
= control target key start
LH: loop header
LB: loop body
LE: loop exit
PB: predicated region body
PF: predicated region fallthrough
CT: control target
= control target key end

     0   :  { %9 = vsyncpa [#allocation6], 0  ;;  %vm47_vm0 = vcmask 261120   ;;  %s369_s0 = inlined_call_operand.vmem [shape: f32[16,32], index: 0, kind: input, shape index: {}]   ;;  %s370_s1 = inlined_call_operand.vmem [shape: s32[16,1], index: 1, kind: input, shape index: {}]   ;;  %s371_s2 = inlined_call_operand.hbm [shape: f32[1,8,128], index: 2, kind: output, shape index: {0}]   ;;  %s372_s3 = inlined_call_operand.hbm [shape: f32[1,8,128], index: 3, kind: output, shape index: {1}]  }
   0x1   :  { %v26_v0 = vld [vmem:[%s369_s0] sm:$0xff]  ;;  %v27_v1 = vld [vmem:[%s369_s0 + $0x8] sm:$0xff] }
   0x2   :  { %10 = vsyncpa [#allocation8], 0  ;;  %v61_v2 = vsel %vm47_vm0, %v26_v0, -inf  ;;  %v64_v3 = vsel %vm47_vm0, %v27_v1, -inf  ;;  %vm19_vm1 = vcmask 7168   ;;  %v273_v5 = vmov 0  }
   0x3   :  { %62 = vmax.xlane.f32.xlu0 %v61_v2  ;;  %v272_v4 = vmov -1e+30   ;;  %210 = vset.pattern.permute.xlu1 %v273_v5  ;;  %v274_v6 = vmov 0.0   ;;  %v318_v7 = vld [vmem:[%s370_s1] sm:$0xff]  ;;  %v326_v16 = vld [vmem:[%s370_s1 + $0x8] sm:$0xff]  ;;  %v30_v17 = vlaneseq  ;;  %s275_s1 = smov [#allocation5]  }
   0x4   :  { %20 = vst.msk [vmem:[#allocation2] sm:$0xff] %vm19_vm1, %v272_v4  ;;  %21 = vst.msk [vmem:[#allocation2 + $0x8] sm:$0xff] %vm19_vm1, %v272_v4  ;;  %211 = vset.pattern.permute.xlu0 %v273_v5  ;;  %vm136_vm4 = vcmp.ne.s32.totalorder %v326_v16, 0  ;;  %vm135_vm5 = vcmp.ne.s32.totalorder %v318_v7, 0  ;;  %s177_s19 = sshll.u32 %s275_s1, 4  ;;  %s276_s21 = smov [#allocation7]   ;;  %s178_s19 = int_to_ptr.vmem [resolvable:$true] %s177_s19 }
   0x5   :  { %22 = vst.msk [vmem:[#allocation3] sm:$0xff] %vm19_vm1, %v274_v6  ;;  %23 = vst.msk [vmem:[#allocation3 + $0x8] sm:$0xff] %vm19_vm1, %v274_v6  ;;  %v31_v18 = vand.u32 127, %v30_v17  ;;  %v199_v2 = vsel %vm135_vm5, 1.0, %v274_v6  ;;  %s187_s22 = sshll.u32 %s276_s21, 4  ;;  %s224_s23 = scalar_lea.vmem %s178_s19, 128  ;;  %s188_s22 = int_to_ptr.vmem [resolvable:$true] %s187_s22 }
   0x6   :  { %24 = vst.msk [vmem:[#allocation4] sm:$0xff] %vm19_vm1, %v274_v6  ;;  %25 = vst.msk [vmem:[#allocation4 + $0x8] sm:$0xff] %vm19_vm1, %v274_v6  ;;  %p225_p0 = scmp.ne.s32.totalorder %s178_s19, %s224_s23  ;;  %p229_p1 = scmp.lt.s32.totalorder %s178_s19, %s178_s19 }
   0x7   :  { %65 = vmax.xlane.f32.xlu0 %v64_v3  ;;  %v200_v3 = vsel %vm136_vm4, 1.0, %v274_v6  ;;  %p230_p2 = scmp.lt.s32.totalorder %s224_s23, %s224_s23 }
   0x9   :  { %p231_p3 = por %p230_p2, %p229_p1 }
   0xb   :  { %v59_v8 = vld [vmem:[#allocation2] sm:$0xff]  ;;  %v60_v11 = vld [vmem:[#allocation2 + $0x8] sm:$0xff]  ;;  %p232_p4 = pnand %p231_p3, %p225_p0 }
   0xc   :  { %v69_v41 = vld [vmem:[#allocation3] sm:$0xff]  ;;  %v70_v45 = vld [vmem:[#allocation3 + $0x8] sm:$0xff] }
   0xd   :  { %v35_v35 = vld [vmem:[#allocation4] sm:$0xff]  ;;  %v36_v50 = vld [vmem:[#allocation4 + $0x8] sm:$0xff] }
  0x1d   :  { %38 = vperm.xlu0 %211, %v318_v7  }
  0x90   :  { %v63_v9 = vpop.xlane.xlu0 %62 }
  0x91   :  { %v67_v10 = vmax.f32 %v59_v8, %v63_v9  ;;  %v155_v9 = vsel %vm19_vm1, %v199_v2, 0.0 }
  0x93   :  { %v71_v12 = vsub.f32 %v59_v8, %v67_v10  ;;  %105 = vst.msk [vmem:[#allocation2] sm:$0xff] %vm19_vm1, %v67_v10  ;;  %81 = vperm.xlu1 %210, %v67_v10   ;;  %v156_v10 = vsel %vm19_vm1, %v200_v3, 0.0 }
  0x94   :  { %v66_v13 = vpop.xlane.xlu0 %65  ;;  %v157_v7 = vadd.f32 %v156_v10, %v155_v9 }
  0x95   :  { %v68_v14 = vmax.f32 %v60_v11, %v66_v13  ;;  %v73_v38 = vmul.f32 1.442695, %v71_v12 }
  0x97   :  { %v72_v15 = vsub.f32 %v60_v11, %v68_v14  ;;  %106 = vst.msk [vmem:[#allocation2 + $0x8] sm:$0xff] %vm19_vm1, %v68_v14  ;;  %86 = vperm.xlu1 %210, %v68_v14  }
  0x99   :  { %v75_v39 = vmul.f32 1.442695, %v72_v15 }
  0x9a   :  { %v110_v57 = vld [vmem:[#allocation2] sm:$0xff] }
  0x9b   :  { %41 = vperm.xlu1 %210, %v326_v16  }
  0x9c   :  { %v39_v19 = vpop.permute.xlu0 %38 }
  0x9d   :  { %vm43_vm2 = vcmp.eq.s32.totalorder %v31_v18, %v39_v19 }
  0x9e   :  { %v45_v20 = vsel %vm43_vm2, %v26_v0, 0.0  ;;  %v111_v62 = vld [vmem:[#allocation2 + $0x8] sm:$0xff] }
  0x9f   :  { %v48_v21 = vsel %vm47_vm0, %v45_v20, 0.0 }
  0xa0   :  { %49 = vadd.xlane.f32.xlu0 %v48_v21 }
 0x112   :  { %v82_v22 = vpop.permute.xlu1 %81 }
 0x113   :  { %v89_v23 = vsub.f32 %v26_v0, %v82_v22 }
 0x115   :  { %v91_v24 = vmul.f32 1.442695, %v89_v23 }
 0x116   :  { %v87_v25 = vpop.permute.xlu1 %86 }
 0x117   :  { %212 = vpow2.f32 %v91_v24  ;;  %v90_v26 = vsub.f32 %v27_v1, %v87_v25 }
 0x119   :  { %v93_v27 = vmul.f32 1.442695, %v90_v26 }
 0x11a   :  { %v42_v29 = vpop.permute.xlu1 %41 }
 0x11b   :  { %214 = vpow2.f32 %v93_v27  ;;  %vm44_vm3 = vcmp.eq.s32.totalorder %v31_v18, %v42_v29 }
 0x11c   :  { %v46_v33 = vsel %vm44_vm3, %v27_v1, 0.0  ;;  %216 = vpow2.f32 %v73_v38 }
 0x11d   :  { %v51_v34 = vsel %vm47_vm0, %v46_v33, 0.0  ;;  %218 = vpow2.f32 %v75_v39 }
 0x121   :  { %v213_v28 = vpop.eup %212 }
 0x122   :  { %v95_v30 = vsel %vm47_vm0, %v213_v28, 0.0 }
 0x123   :  { %96 = vadd.xlane.f32.xlu1 %v95_v30 }
 0x125   :  { %v215_v31 = vpop.eup %214 }
 0x126   :  { %v98_v32 = vsel %vm47_vm0, %v215_v31, 0.0  ;;  %v217_v40 = vpop.eup %216 }
 0x127   :  { %99 = vadd.xlane.f32.xlu1 %v98_v32  ;;  %v77_v42 = vmul.f32 %v217_v40, %v69_v41  ;;  %v219_v43 = vpop.eup %218 }
 0x128   :  { %v78_v47 = vmul.f32 %v219_v43, %v70_v45 }
 0x12b   :  { %52 = vadd.xlane.f32.xlu1 %v51_v34 }
 0x12d   :  { %v50_v36 = vpop.xlane.xlu0 %49 }
 0x12e   :  { %v54_v37 = vadd.f32 %v50_v36, %v35_v35 }
 0x130   :  { %57 = vst.msk [vmem:[#allocation4] sm:$0xff] %vm19_vm1, %v54_v37 }
 0x137   :  { %v120_v60 = vld [vmem:[#allocation4] sm:$0xff] }
 0x1b0   :  { %v97_v44 = vpop.xlane.xlu1 %96 }
 0x1b1   :  { %v101_v46 = vadd.f32 %v97_v44, %v77_v42 }
 0x1b3   :  { %103 = vst.msk [vmem:[#allocation3] sm:$0xff] %vm19_vm1, %v101_v46 }
 0x1b4   :  { %v100_v48 = vpop.xlane.xlu1 %99 }
 0x1b5   :  { %v102_v49 = vadd.f32 %v100_v48, %v78_v47 }
 0x1b7   :  { %104 = vst.msk [vmem:[#allocation3 + $0x8] sm:$0xff] %vm19_vm1, %v102_v49 }
 0x1b8   :  { %v53_v51 = vpop.xlane.xlu1 %52 }
 0x1b9   :  { %v55_v52 = vadd.f32 %v53_v51, %v36_v50 }
 0x1ba   :  { %v112_v53 = vld [vmem:[#allocation3] sm:$0xff] }
 0x1bb   :  { %58 = vst.msk [vmem:[#allocation4 + $0x8] sm:$0xff] %vm19_vm1, %v55_v52  ;;  %220 = vlog2.f32 %v112_v53 }
 0x1be   :  { %v113_v54 = vld [vmem:[#allocation3 + $0x8] sm:$0xff] }
 0x1bf   :  { %222 = vlog2.f32 %v113_v54 }
 0x1c2   :  { %v121_v1 = vld [vmem:[#allocation4 + $0x8] sm:$0xff] }
 0x1c5   :  { %v221_v55 = vpop.eup %220 }
 0x1c6   :  { %v115_v56 = vmul.f32 0.6931472, %v221_v55 }
 0x1c8   :  { %v118_v58 = vadd.f32 %v115_v56, %v110_v57 }
 0x1c9   :  { %v223_v59 = vpop.eup %222 }
 0x1ca   :  { %v117_v61 = vmul.f32 0.6931472, %v223_v59  ;;  %v122_v0 = vsub.f32 %v118_v58, %v120_v60 }
 0x1cc   :  { %v119_v63 = vadd.f32 %v117_v61, %v111_v62  ;;  %v139_v5 = vsel %vm19_vm1, %v122_v0, 0.0 }
 0x1ce   :  { %v123_v4 = vsub.f32 %v119_v63, %v121_v1 }
 0x1d0   :  { %v140_v8 = vsel %vm19_vm1, %v123_v4, 0.0 }
 0x1d1   :  { %v141_v11 = vadd.f32 %v140_v8, %v139_v5 }
 0x1d3   :  { %142 = vadd.xlane.f32.xlu1 %v141_v11 }
 0x1d7   :  { %158 = vadd.xlane.f32.xlu1 %v157_v7 }
 0x260   :  { %v143_v12 = vpop.xlane.xlu1 %142 }
 0x261   :  { %v144_v13 = vrot.slane %v143_v12, 4 }
 0x263   :  { %v145_v14 = vadd.f32 %v144_v13, %v143_v12 }
 0x264   :  { %v159_v15 = vpop.xlane.xlu1 %158 }
 0x265   :  { %v146_v16 = vrot.slane %v145_v14, 2  ;;  %v160_v17 = vrot.slane %v159_v15, 4 }
 0x267   :  { %v161_v6 = vadd.f32 %v160_v17, %v159_v15  ;;  %v147_v18 = vadd.f32 %v146_v16, %v145_v14 }
 0x269   :  { %v162_v19 = vrot.slane %v161_v6, 2  ;;  %v148_v20 = vrot.slane %v147_v18, 1 }
 0x26b   :  { %v163_v21 = vadd.f32 %v162_v19, %v161_v6  ;;  %v149_v22 = vadd.f32 %v148_v20, %v147_v18 }
 0x26d   :  { %201 = vpush %v149_v22  ;;  %v164_v23 = vrot.slane %v163_v21, 1 }
 0x26f   :  { %v165_v24 = vadd.f32 %v164_v23, %v163_v21 }
 0x271   :  { %203 = vpush %v165_v24 }
 0x29e   :  { %s202_s20 = spop %201 }
 0x29f   :  { %v167_v25 = vstv %s202_s20 }
 0x2a0   :  { %168 = vst [vmem:[#allocation5] sm:$0xff] %v167_v25 }
 0x2a1   :  { %235 = shalt.err (!%p232_p4)
}
 0x2a2   :  { %s236_s26 = scalar_lea.hbm %s371_s2, 128 }
 0x2a3   :  { %p237_p5 = scmp.ne.s32.totalorder %s371_s2, %s236_s26  ;;  %p240_p6 = scmp.lt.u32.totalorder %s236_s26, %s371_s2 }
 0x2a5   :  { %p242_p7 = pnand %p240_p6, %p237_p5 }
 0x2a7   :  { %245 = shalt.err (!%p242_p7)
}
 0x2a8   :  { %180 = dma.vmem_to_hbm [thread:$0]  %s178_s19, 128, %s371_s2, [#allocation6]  }
 0x2a9   :  { %s204_s6 = spop %203  ;;  %s246_s7 = scalar_lea.vmem %s188_s22, 128 }
 0x2aa   :  { %v169_v26 = vstv %s204_s6  ;;  %p247_p8 = scmp.ne.s32.totalorder %s188_s22, %s246_s7  ;;  %p251_p9 = scmp.lt.s32.totalorder %s188_s22, %s188_s22 }
 0x2ab   :  { %170 = vst [vmem:[#allocation7] sm:$0xff] %v169_v26  ;;  %p252_p10 = scmp.lt.s32.totalorder %s246_s7, %s246_s7 }
 0x2ad   :  { %p253_p11 = por %p252_p10, %p251_p9 }
 0x2af   :  { %p254_p12 = pnand %p253_p11, %p247_p8 }
 0x2b1   :  { %257 = shalt.err (!%p254_p12)
}
 0x2b2   :  { %s258_s10 = scalar_lea.hbm %s372_s3, 128 }
 0x2b3   :  { %p259_p13 = scmp.ne.s32.totalorder %s372_s3, %s258_s10  ;;  %p262_p0 = scmp.lt.u32.totalorder %s258_s10, %s372_s3 }
 0x2b5   :  { %p264_p1 = pnand %p262_p0, %p259_p13 }
 0x2b7   :  { %267 = shalt.err (!%p264_p1)
}
 0x2b8   :  { %190 = dma.vmem_to_hbm [thread:$0]  %s188_s22, 128, %s372_s3, [#allocation8]  }
 0x2b9   :  { %268 = dma.done.wait [#allocation6], 128  }
 0x2ba   :  { %269 = vsyncadd [#allocation6], 4294967168 }
 0x2bb   :  { %270 = dma.done.wait [#allocation8], 128  }
 0x2bc   :  { %271 = vsyncadd [#allocation8], 4294967168 }
 0x2bd   :  { %197 = vsyncpa [#allocation6], 1 }
 0x2be   :  { %198 = vsyncpa [#allocation8], 1 }

</bundles_post_ra>
